<compile_context>
chip_gen: v7x
topology: tpu7x:2x2x1
jax: 0.10.0
libtpu: 0.0.40
codegen_flags: <defaults>
</compile_context>

<pallas_src>
import functools

import jax
import jax.numpy as jnp
from jax.experimental import pallas as pl
from jax.experimental.pallas import tpu as pltpu

_OUT_LANES = 128  # lane-aligned per-tile output block width


def _round_up(x, m):
    return ((x + m - 1) // m) * m


def _blk_bytes(rows, cols, itemsize):
    """Bytes one (rows, cols) VMEM block occupies after (8,128) tile padding."""
    return _round_up(max(rows, 1), 8) * _round_up(max(cols, 1), 128) * itemsize


def _tensorcores_per_chip():
    """Best-effort TC count per chip (perf heuristic only; 1 is always safe)."""
    try:
        kind = jax.devices()[0].device_kind.lower()
    except Exception:
        return 1
    for tag in ("v7", "v5p", "v4"):
        if tag in kind:
            return 2
    return 1


def _vmem_capacity_bytes():
    try:
        return int(pltpu.get_tpu_info().vmem_capacity_bytes)
    except Exception:
        return 64 * 1024 * 1024  # conservative (v7x per-core physical VMEM)


def _supcon_kernel(anchor_ref, contrast_ref, alab_ref, clab_ref, out_ref, *,
                   inv_temp, loss_scale, n_anchor):
    """Per-tile SupCon partial loss sum.

    anchor_ref   : (tm, D)   anchor features tile (rows may be zero padding)
    contrast_ref : (D, Nc)   all contrast features, pre-transposed (resident)
    alab_ref     : (tm, 1)   int32 labels of this anchor tile
    clab_ref     : (1, Nc)   int32 labels of all contrast samples
    out_ref      : (1, 128)  per-tile loss sum broadcast across lanes
    """
    tm = anchor_ref.shape[0]
    nc = contrast_ref.shape[1]

    a = anchor_ref[...]
    ct = contrast_ref[...]

    # (tm, D) x (D, Nc) on the MXU, f32 accumulate.
    logits = jax.lax.dot_general(
        a, ct,
        dimension_numbers=(((1,), (0,)), ((), ())),
        preferred_element_type=jnp.float32) * inv_temp

    # Row-max subtraction (matches logits_max.detach(); max over ALL columns).
    logits = logits - jnp.max(logits, axis=1, keepdims=True)

    # Masks rebuilt in-kernel from slim (tm,1)/(1,nc) iotas (broadcast compare).
    row0 = pl.program_id(0) * tm
    row_ids = jax.lax.broadcasted_iota(jnp.int32, (tm, 1), 0) + row0    # (tm, 1)
    col_ids = jax.lax.broadcasted_iota(jnp.int32, (1, nc), 1)           # (1, nc)
    not_self = row_ids != col_ids                                       # logits_mask

    alab = alab_ref[...]                                                # (tm, 1)
    clab = clab_ref[...]                                                # (1, nc)
    pos = jnp.logical_and(alab == clab, not_self)                       # positives

    # Folded log-softmax: never materialize log_prob = logits - log(exp_sum).
    exp_sum = jnp.sum(jnp.where(not_self, jnp.exp(logits), 0.0),
                      axis=1, keepdims=True)                            # (tm, 1)
    pos_cnt = jnp.sum(pos.astype(jnp.float32), axis=1, keepdims=True)   # (tm, 1)
    sum_pos_logits = jnp.sum(jnp.where(pos, logits, 0.0),
                             axis=1, keepdims=True)                     # (tm, 1)

    # 0/0 -> NaN for rows with no positives (matches PyTorch); padded rows are
    # excluded by global row index BEFORE the tile sum so their NaNs cannot leak.
    mean_log_prob_pos = sum_pos_logits / pos_cnt - jnp.log(exp_sum)
    loss_row = loss_scale * mean_log_prob_pos                           # (tm, 1)

    valid = row_ids < n_anchor                                          # (tm, 1)
    tile_sum = jnp.sum(jnp.where(valid, loss_row, 0.0),
                       axis=0, keepdims=True)                           # (1, 1)

    out_ref[...] = jnp.broadcast_to(tile_sum, out_ref.shape).astype(out_ref.dtype)


def supcon_loss(features, labels=None, mask=None, *,
                temperature=0.07, contrast_mode='all', base_temperature=0.07,
                compute_dtype=jnp.bfloat16):
    """JAX/Pallas equivalent of SupConLoss.forward."""
    features = jnp.asarray(features)
    if features.ndim < 3:
        raise ValueError('`features` needs to be [bsz, n_views, ...]')
    bsz, n_views = features.shape[0], features.shape[1]
    feats = features.reshape(bsz, n_views, -1)
    dim = feats.shape[-1]

    if labels is not None and mask is not None:
        raise ValueError('Cannot define both `labels` and `mask`')

    if mask is not None:
        # TODO(synk): arbitrary (possibly asymmetric) user masks have no label
        # encoding; this rare path stays in plain JAX.
        return _supcon_loss_ref(features, mask=mask, temperature=temperature,
                                contrast_mode=contrast_mode,
                                base_temperature=base_temperature)

    contrast_count = n_views
    # torch.cat(torch.unbind(features, dim=1), dim=0) == views stacked along batch
    contrast_feature = jnp.concatenate([feats[:, v] for v in range(n_views)], axis=0)
    contrast_c = contrast_feature.astype(compute_dtype)

    if contrast_mode == 'one':
        anchor_c = feats[:, 0].astype(compute_dtype)
        anchor_count = 1
    elif contrast_mode == 'all':
        anchor_c = contrast_c
        anchor_count = contrast_count
    else:
        raise ValueError('Unknown mode: {}'.format(contrast_mode))

    n_anchor = anchor_count * bsz
    n_contrast = contrast_count * bsz

    if labels is None:
        # SimCLR: eye mask == "same sample index" labels.
        base_labels = jnp.arange(bsz, dtype=jnp.int32)
    else:
        labels = jnp.asarray(labels).reshape(-1)
        if labels.shape[0] != bsz:
            raise ValueError('Num of labels does not match num of features')
        base_labels = labels.astype(jnp.int32)

    contrast_labels = jnp.tile(base_labels, contrast_count)          # [n_contrast]
    anchor_labels = contrast_labels if contrast_mode == 'all' else base_labels

    # Anchor tile: full MXU row occupancy when possible; on 2-TC chips make sure
    # the parallel grid has at least 2 tiles so both TensorCores get work.
    tm = min(128, _round_up(n_anchor, 8))
    n_cores = _tensorcores_per_chip()
    if n_cores > 1 and n_anchor > 8:
        tm = min(tm, max(8, _round_up(pl.cdiv(n_anchor, n_cores), 8)))
    n_pad = _round_up(n_anchor, tm)
    pad = n_pad - n_anchor
    n_tiles = n_pad // tm

    anchor_p = jnp.pad(anchor_c, ((0, pad), (0, 0)))
    contrast_t = contrast_c.T                                         # (D, Nc), once
    alab_p = jnp.pad(anchor_labels, (0, pad), constant_values=-1).reshape(n_pad, 1)
    clab = contrast_labels.reshape(1, n_contrast)

    # VMEM sizing: only raise the scoped limit when the resident blocks need it,
    # and stay well below the physical per-core capacity (headroom on v7x).
    feat_isz = jnp.dtype(compute_dtype).itemsize
    est_bytes = (2 * _blk_bytes(tm, dim, feat_isz)            # anchor (double buf)
                 + 2 * _blk_bytes(dim, n_contrast, feat_isz)  # contrast (worst case)
                 + 2 * _blk_bytes(tm, 1, 4)                   # anchor labels
                 + 2 * _blk_bytes(1, n_contrast, 4)           # contrast labels
                 + 2 * _blk_bytes(1, _OUT_LANES, 4)           # output
                 + 6 * _blk_bytes(tm, n_contrast, 4))         # in-kernel temporaries
    cp_kwargs = dict(dimension_semantics=("parallel",))
    if est_bytes > (16 << 20):                                # smallest default (v5e)
        cap = _vmem_capacity_bytes()
        ceiling = max(cap - (16 << 20), cap // 2)
        cp_kwargs["vmem_limit_bytes"] = int(min(max(est_bytes, 32 << 20), ceiling))
    compiler_params = pltpu.CompilerParams(**cp_kwargs)

    kernel = functools.partial(
        _supcon_kernel,
        inv_temp=1.0 / float(temperature),
        loss_scale=-(float(temperature) / float(base_temperature)),
        n_anchor=n_anchor)

    def _run(const_pipeline_mode):
        const_kwargs = ({} if const_pipeline_mode is None
                        else {"pipeline_mode": const_pipeline_mode})
        in_specs = [
            pl.BlockSpec((tm, dim), lambda i: (i, 0)),                   # anchor tile
            pl.BlockSpec((dim, n_contrast), lambda i: (0, 0),            # contrast
                         **const_kwargs),                                #  (resident)
            pl.BlockSpec((tm, 1), lambda i: (i, 0)),                     # anchor labels
            pl.BlockSpec((1, n_contrast), lambda i: (0, 0),              # contrast lbls
                         **const_kwargs),
        ]
        return pl.pallas_call(
            kernel,
            out_shape=jax.ShapeDtypeStruct((1, n_tiles * _OUT_LANES), jnp.float32),
            grid_spec=pltpu.PrefetchScalarGridSpec(
                num_scalar_prefetch=0,
                grid=(n_tiles,),
                in_specs=in_specs,
                out_specs=pl.BlockSpec((1, _OUT_LANES), lambda i: (0, i)),
            ),
            compiler_params=compiler_params,
        )(anchor_p, contrast_t, alab_p, clab)

    try:
        # Grid-invariant blocks single-buffered: halves the largest VMEM alloc.
        per_lane = _run(pl.Buffered(1))
    except Exception:
        # TODO(synk): drop this fallback once Buffered(1) inputs are universally
        # supported; default double-buffering is correct, just uses more VMEM.
        per_lane = _run(None)

    # Each tile wrote its partial sum broadcast across 128 lanes; take lane 0.
    per_tile = per_lane.reshape(n_tiles, _OUT_LANES)[:, 0]
    # loss.view(anchor_count, batch_size).mean() == mean over all valid anchor rows.
    return jnp.sum(per_tile) / n_anchor


def _supcon_loss_ref(features, labels=None, mask=None, *, temperature=0.07,
                     contrast_mode='all', base_temperature=0.07):
    """Pure-JAX reference mirroring the PyTorch code (also used for the mask path)."""
    features = jnp.asarray(features)
    bsz, n_views = features.shape[0], features.shape[1]
    feats = features.reshape(bsz, n_views, -1).astype(jnp.float32)
    if labels is None and mask is None:
        mask = jnp.eye(bsz, dtype=jnp.float32)
    elif labels is not None:
        labels = jnp.asarray(labels).reshape(-1, 1)
        mask = (labels == labels.T).astype(jnp.float32)
    else:
        mask = jnp.asarray(mask).astype(jnp.float32)
    contrast_count = n_views
    contrast_feature = jnp.concatenate([feats[:, v] for v in range(n_views)], axis=0)
    if contrast_mode == 'one':
        anchor_feature = feats[:, 0]
        anchor_count = 1
    else:
        anchor_feature = contrast_feature
        anchor_count = contrast_count
    logits = anchor_feature @ contrast_feature.T / temperature
    logits = logits - jnp.max(logits, axis=1, keepdims=True)
    mask = jnp.tile(mask, (anchor_count, contrast_count))
    n_a = anchor_count * bsz
    n_c = contrast_count * bsz
    logits_mask = 1.0 - jnp.eye(n_a, n_c, dtype=jnp.float32)
    mask = mask * logits_mask
    exp_logits = jnp.exp(logits) * logits_mask
    log_prob = logits - jnp.log(exp_logits.sum(1, keepdims=True))
    mean_log_prob_pos = (mask * log_prob).sum(1) / mask.sum(1)
    loss = -(temperature / base_temperature) * mean_log_prob_pos
    return loss.reshape(anchor_count, bsz).mean()


if __name__ == "__main__":
    key = jax.random.PRNGKey(0)
    k1, k2, k3, k4 = jax.random.split(key, 4)

    # (1) small supervised case, contrast_mode='all'
    bsz, n_views, dim = 8, 2, 32
    f1 = jax.random.normal(k1, (bsz, n_views, dim), dtype=jnp.float32)
    f1 = f1 / jnp.linalg.norm(f1, axis=-1, keepdims=True)
    lab1 = jax.random.randint(k2, (bsz,), 0, 4)
    ref1 = _supcon_loss_ref(f1, labels=lab1)
    out1 = jax.block_until_ready(supcon_loss(f1, labels=lab1))            # bf16 path
    assert jnp.allclose(out1, ref1, rtol=5e-2, atol=5e-2), (out1, ref1)
    out1_f32 = jax.block_until_ready(
        supcon_loss(f1, labels=lab1, compute_dtype=jnp.float32))          # exact path
    assert jnp.allclose(out1_f32, ref1, rtol=1e-4, atol=1e-5), (out1_f32, ref1)

    # (2) larger case: exercises multi-tile grid + anchor-row padding
    bsz2, n_views2, dim2 = 96, 2, 64
    f2 = jax.random.normal(k3, (bsz2, n_views2, dim2), dtype=jnp.float32)
    f2 = f2 / jnp.linalg.norm(f2, axis=-1, keepdims=True)
    lab2 = jax.random.randint(k4, (bsz2,), 0, 10)
    ref2 = _supcon_loss_ref(f2, labels=lab2)
    out2 = jax.block_until_ready(supcon_loss(f2, labels=lab2))
    assert jnp.allclose(out2, ref2, rtol=5e-2, atol=5e-2), (out2, ref2)

    # (3) SimCLR degenerate case (no labels / mask)
    ref3 = _supcon_loss_ref(f1)
    out3 = jax.block_until_ready(supcon_loss(f1))
    assert jnp.allclose(out3, ref3, rtol=5e-2, atol=5e-2), (out3, ref3)

    # (4) contrast_mode='one'
    ref4 = _supcon_loss_ref(f1, labels=lab1, contrast_mode='one')
    out4 = jax.block_until_ready(supcon_loss(f1, labels=lab1, contrast_mode='one'))
    assert jnp.allclose(out4, ref4, rtol=5e-2, atol=5e-2), (out4, ref4)

    print("KERNEL_OK")
</pallas_src>

<mosaic_0001>
module attributes {stable_mosaic.version = 11 : i64} {
  func.func @_supcon_kernel(%arg0: i32, %arg1: memref<16x32xbf16, #tpu.memory_space<vmem>>, %arg2: memref<32x16xbf16, #tpu.memory_space<vmem>>, %arg3: memref<16x1xi32, #tpu.memory_space<vmem>>, %arg4: memref<1x16xi32, #tpu.memory_space<vmem>>, %arg5: memref<1x128xf32, #tpu.memory_space<vmem>>) attributes {dimension_semantics = [#tpu.dimension_semantics<parallel>], iteration_bounds = array<i64: 1>, scalar_prefetch = 0 : i64, scratch_operands = 0 : i64, tpu.core_type = #tpu.core_type<tc>, window_params = [{transform_indices = @transform_0, window_bounds = array<i64: 16, 32>}, {pipeline_mode = #tpu.pipeline_mode<synchronous>, transform_indices = @transform_1, window_bounds = array<i64: 32, 16>}, {transform_indices = @transform_2, window_bounds = array<i64: 16, 1>}, {pipeline_mode = #tpu.pipeline_mode<synchronous>, transform_indices = @transform_3, window_bounds = array<i64: 1, 16>}, {transform_indices = @transform_4, window_bounds = array<i64: 1, 128>}]} {
    %c0 = arith.constant 0 : index
    %c0_0 = arith.constant 0 : index
    %0 = vector.load %arg1[%c0, %c0_0] : memref<16x32xbf16, #tpu.memory_space<vmem>>, vector<16x32xbf16>
    %c0_1 = arith.constant 0 : index
    %c0_2 = arith.constant 0 : index
    %1 = vector.load %arg2[%c0_1, %c0_2] : memref<32x16xbf16, #tpu.memory_space<vmem>>, vector<32x16xbf16>
    %cst = arith.constant dense<0.000000e+00> : vector<16x16xf32>
    %2 = tpu.matmul %0, %1, %cst {dimension_numbers = #tpu.dot_dimension_numbers<[1], [0], [0], [1], [0, 0, 1, 1], [], []>} : vector<16x32xbf16>, vector<32x16xbf16>, vector<16x16xf32> -> vector<16x16xf32>
    %cst_3 = arith.constant 14.2857141 : f32
    %3 = vector.broadcast %cst_3 : f32 to vector<16x16xf32>
    %4 = arith.mulf %2, %3 : vector<16x16xf32>
    %cst_4 = arith.constant dense<0xFF800000> : vector<16xf32>
    %5 = vector.multi_reduction <maximumf>, %4, %cst_4 [1] : vector<16x16xf32> to vector<16xf32>
    %6 = vector.shape_cast %5 : vector<16xf32> to vector<16x1xf32>
    %7 = vector.broadcast %6 : vector<16x1xf32> to vector<16x16xf32>
    %8 = arith.subf %4, %7 : vector<16x16xf32>
    %c16_i32 = arith.constant 16 : i32
    %9 = arith.muli %arg0, %c16_i32 : i32
    %10 = tpu.iota {dimensions = array<i32: 0>} : vector<16x1xi32>
    %11 = vector.broadcast %9 : i32 to vector<16x1xi32>
    %12 = arith.addi %10, %11 : vector<16x1xi32>
    %13 = tpu.iota {dimensions = array<i32: 1>} : vector<1x16xi32>
    %14 = vector.broadcast %12 : vector<16x1xi32> to vector<16x16xi32>
    %15 = vector.broadcast %13 : vector<1x16xi32> to vector<16x16xi32>
    %16 = arith.cmpi ne, %14, %15 : vector<16x16xi32>
    %c0_5 = arith.constant 0 : index
    %c0_6 = arith.constant 0 : index
    %17 = vector.load %arg3[%c0_5, %c0_6] : memref<16x1xi32, #tpu.memory_space<vmem>>, vector<16x1xi32>
    %c0_7 = arith.constant 0 : index
    %c0_8 = arith.constant 0 : index
    %18 = vector.load %arg4[%c0_7, %c0_8] : memref<1x16xi32, #tpu.memory_space<vmem>>, vector<1x16xi32>
    %19 = vector.broadcast %17 : vector<16x1xi32> to vector<16x16xi32>
    %20 = vector.broadcast %18 : vector<1x16xi32> to vector<16x16xi32>
    %21 = arith.cmpi eq, %19, %20 : vector<16x16xi32>
    %22 = arith.andi %21, %16 : vector<16x16xi1>
    %23 = math.exp %8 : vector<16x16xf32>
    %cst_9 = arith.constant 0.000000e+00 : f32
    %24 = vector.broadcast %cst_9 : f32 to vector<16x16xf32>
    %25 = arith.select %16, %23, %24 : vector<16x16xi1>, vector<16x16xf32>
    %cst_10 = arith.constant dense<0.000000e+00> : vector<16xf32>
    %26 = vector.multi_reduction <add>, %25, %cst_10 [1] : vector<16x16xf32> to vector<16xf32>
    %27 = vector.shape_cast %26 : vector<16xf32> to vector<16x1xf32>
    %28 = arith.extui %22 : vector<16x16xi1> to vector<16x16xi32>
    %29 = arith.sitofp %28 : vector<16x16xi32> to vector<16x16xf32>
    %cst_11 = arith.constant dense<0.000000e+00> : vector<16xf32>
    %30 = vector.multi_reduction <add>, %29, %cst_11 [1] : vector<16x16xf32> to vector<16xf32>
    %31 = vector.shape_cast %30 : vector<16xf32> to vector<16x1xf32>
    %cst_12 = arith.constant 0.000000e+00 : f32
    %32 = vector.broadcast %cst_12 : f32 to vector<16x16xf32>
    %33 = arith.select %22, %8, %32 : vector<16x16xi1>, vector<16x16xf32>
    %cst_13 = arith.constant dense<0.000000e+00> : vector<16xf32>
    %34 = vector.multi_reduction <add>, %33, %cst_13 [1] : vector<16x16xf32> to vector<16xf32>
    %35 = vector.shape_cast %34 : vector<16xf32> to vector<16x1xf32>
    %36 = arith.divf %35, %31 : vector<16x1xf32>
    %37 = math.log %27 : vector<16x1xf32>
    %38 = arith.subf %36, %37 : vector<16x1xf32>
    %cst_14 = arith.constant -1.000000e+00 : f32
    %39 = vector.broadcast %cst_14 : f32 to vector<16x1xf32>
    %40 = arith.mulf %39, %38 : vector<16x1xf32>
    %c16_i32_15 = arith.constant 16 : i32
    %41 = vector.broadcast %c16_i32_15 : i32 to vector<16x1xi32>
    %42 = arith.cmpi slt, %12, %41 : vector<16x1xi32>
    %cst_16 = arith.constant 0.000000e+00 : f32
    %43 = vector.broadcast %cst_16 : f32 to vector<16x1xf32>
    %44 = arith.select %42, %40, %43 : vector<16x1xi1>, vector<16x1xf32>
    %cst_17 = arith.constant dense<0.000000e+00> : vector<1xf32>
    %45 = vector.multi_reduction <add>, %44, %cst_17 [0] : vector<16x1xf32> to vector<1xf32>
    %46 = vector.shape_cast %45 : vector<1xf32> to vector<1x1xf32>
    %47 = vector.shape_cast %46 : vector<1x1xf32> to vector<1x1xf32>
    %48 = vector.broadcast %47 : vector<1x1xf32> to vector<1x128xf32>
    %c0_18 = arith.constant 0 : index
    %c0_19 = arith.constant 0 : index
    %49 = vector.load %arg5[%c0_18, %c0_19] : memref<1x128xf32, #tpu.memory_space<vmem>>, vector<1x128xf32>
    tpu.vector_store %arg5[%c0_18, %c0_19], %48 {strides = array<i32>} : memref<1x128xf32, #tpu.memory_space<vmem>>, vector<1x128xf32>,
    return
  }
  func.func @transform_0(%arg0: i32) -> (i32, i32) {
    %c0_i32 = arith.constant 0 : i32
    %c0_i32_0 = arith.constant 0 : i32
    return %arg0, %c0_i32 : i32, i32
  }
  func.func @transform_1(%arg0: i32) -> (i32, i32) {
    %c0_i32 = arith.constant 0 : i32
    %c0_i32_0 = arith.constant 0 : i32
    %c0_i32_1 = arith.constant 0 : i32
    return %c0_i32, %c0_i32_0 : i32, i32
  }
  func.func @transform_2(%arg0: i32) -> (i32, i32) {
    %c0_i32 = arith.constant 0 : i32
    %c0_i32_0 = arith.constant 0 : i32
    return %arg0, %c0_i32 : i32, i32
  }
  func.func @transform_3(%arg0: i32) -> (i32, i32) {
    %c0_i32 = arith.constant 0 : i32
    %c0_i32_0 = arith.constant 0 : i32
    %c0_i32_1 = arith.constant 0 : i32
    return %c0_i32, %c0_i32_0 : i32, i32
  }
  func.func @transform_4(%arg0: i32) -> (i32, i32) {
    %c0_i32 = arith.constant 0 : i32
    %c0_i32_0 = arith.constant 0 : i32
    return %c0_i32, %arg0 : i32, i32
  }
}

module attributes {stable_mosaic.version = 11 : i64} {
  func.func @_supcon_kernel(%arg0: i32, %arg1: memref<16x32xbf16, #tpu.memory_space<vmem>>, %arg2: memref<32x16xbf16, #tpu.memory_space<vmem>>, %arg3: memref<16x1xi32, #tpu.memory_space<vmem>>, %arg4: memref<1x16xi32, #tpu.memory_space<vmem>>, %arg5: memref<1x128xf32, #tpu.memory_space<vmem>>) attributes {dimension_semantics = [#tpu.dimension_semantics<parallel>], iteration_bounds = array<i64: 1>, scalar_prefetch = 0 : i64, scratch_operands = 0 : i64, tpu.core_type = #tpu.core_type<tc>, window_params = [{transform_indices = @transform_0, window_bounds = array<i64: 16, 32>}, {pipeline_mode = #tpu.pipeline_mode<synchronous>, transform_indices = @transform_1, window_bounds = array<i64: 32, 16>}, {transform_indices = @transform_2, window_bounds = array<i64: 16, 1>}, {pipeline_mode = #tpu.pipeline_mode<synchronous>, transform_indices = @transform_3, window_bounds = array<i64: 1, 16>}, {transform_indices = @transform_4, window_bounds = array<i64: 1, 128>}]} {
    %c0 = arith.constant 0 : index
    %c0_0 = arith.constant 0 : index
    %0 = vector.load %arg1[%c0, %c0_0] : memref<16x32xbf16, #tpu.memory_space<vmem>>, vector<16x32xbf16>
    %c0_1 = arith.constant 0 : index
    %c0_2 = arith.constant 0 : index
    %1 = vector.load %arg2[%c0_1, %c0_2] : memref<32x16xbf16, #tpu.memory_space<vmem>>, vector<32x16xbf16>
    %cst = arith.constant dense<0.000000e+00> : vector<16x16xf32>
    %2 = tpu.matmul %0, %1, %cst {dimension_numbers = #tpu.dot_dimension_numbers<[1], [0], [0], [1], [0, 0, 1, 1], [], []>} : vector<16x32xbf16>, vector<32x16xbf16>, vector<16x16xf32> -> vector<16x16xf32>
    %cst_3 = arith.constant 14.2857141 : f32
    %3 = vector.broadcast %cst_3 : f32 to vector<16x16xf32>
    %4 = arith.mulf %2, %3 : vector<16x16xf32>
    %cst_4 = arith.constant dense<0xFF800000> : vector<16xf32>
    %5 = vector.multi_reduction <maximumf>, %4, %cst_4 [1] : vector<16x16xf32> to vector<16xf32>
    %6 = vector.shape_cast %5 : vector<16xf32> to vector<16x1xf32>
    %7 = vector.broadcast %6 : vector<16x1xf32> to vector<16x16xf32>
    %8 = arith.subf %4, %7 : vector<16x16xf32>
    %c16_i32 = arith.constant 16 : i32
    %9 = arith.muli %arg0, %c16_i32 : i32
    %10 = tpu.iota {dimensions = array<i32: 0>} : vector<16x1xi32>
    %11 = vector.broadcast %9 : i32 to vector<16x1xi32>
    %12 = arith.addi %10, %11 : vector<16x1xi32>
    %13 = tpu.iota {dimensions = array<i32: 1>} : vector<1x16xi32>
    %14 = vector.broadcast %12 : vector<16x1xi32> to vector<16x16xi32>
    %15 = vector.broadcast %13 : vector<1x16xi32> to vector<16x16xi32>
    %16 = arith.cmpi ne, %14, %15 : vector<16x16xi32>
    %c0_5 = arith.constant 0 : index
    %c0_6 = arith.constant 0 : index
    %17 = vector.load %arg3[%c0_5, %c0_6] : memref<16x1xi32, #tpu.memory_space<vmem>>, vector<16x1xi32>
    %c0_7 = arith.constant 0 : index
    %c0_8 = arith.constant 0 : index
    %18 = vector.load %arg4[%c0_7, %c0_8] : memref<1x16xi32, #tpu.memory_space<vmem>>, vector<1x16xi32>
    %19 = vector.broadcast %17 : vector<16x1xi32> to vector<16x16xi32>
    %20 = vector.broadcast %18 : vector<1x16xi32> to vector<16x16xi32>
    %21 = arith.cmpi eq, %19, %20 : vector<16x16xi32>
    %22 = arith.andi %21, %16 : vector<16x16xi1>
    %23 = math.exp %8 : vector<16x16xf32>
    %cst_9 = arith.constant 0.000000e+00 : f32
    %24 = vector.broadcast %cst_9 : f32 to vector<16x16xf32>
    %25 = arith.select %16, %23, %24 : vector<16x16xi1>, vector<16x16xf32>
    %cst_10 = arith.constant dense<0.000000e+00> : vector<16xf32>
    %26 = vector.multi_reduction <add>, %25, %cst_10 [1] : vector<16x16xf32> to vector<16xf32>
    %27 = vector.shape_cast %26 : vector<16xf32> to vector<16x1xf32>
    %28 = arith.extui %22 : vector<16x16xi1> to vector<16x16xi32>
    %29 = arith.sitofp %28 : vector<16x16xi32> to vector<16x16xf32>
    %cst_11 = arith.constant dense<0.000000e+00> : vector<16xf32>
    %30 = vector.multi_reduction <add>, %29, %cst_11 [1] : vector<16x16xf32> to vector<16xf32>
    %31 = vector.shape_cast %30 : vector<16xf32> to vector<16x1xf32>
    %cst_12 = arith.constant 0.000000e+00 : f32
    %32 = vector.broadcast %cst_12 : f32 to vector<16x16xf32>
    %33 = arith.select %22, %8, %32 : vector<16x16xi1>, vector<16x16xf32>
    %cst_13 = arith.constant dense<0.000000e+00> : vector<16xf32>
    %34 = vector.multi_reduction <add>, %33, %cst_13 [1] : vector<16x16xf32> to vector<16xf32>
    %35 = vector.shape_cast %34 : vector<16xf32> to vector<16x1xf32>
    %36 = arith.divf %35, %31 : vector<16x1xf32>
    %37 = math.log %27 : vector<16x1xf32>
    %38 = arith.subf %36, %37 : vector<16x1xf32>
    %cst_14 = arith.constant -1.000000e+00 : f32
    %39 = vector.broadcast %cst_14 : f32 to vector<16x1xf32>
    %40 = arith.mulf %39, %38 : vector<16x1xf32>
    %c16_i32_15 = arith.constant 16 : i32
    %41 = vector.broadcast %c16_i32_15 : i32 to vector<16x1xi32>
    %42 = arith.cmpi slt, %12, %41 : vector<16x1xi32>
    %cst_16 = arith.constant 0.000000e+00 : f32
    %43 = vector.broadcast %cst_16 : f32 to vector<16x1xf32>
    %44 = arith.select %42, %40, %43 : vector<16x1xi1>, vector<16x1xf32>
    %cst_17 = arith.constant dense<0.000000e+00> : vector<1xf32>
    %45 = vector.multi_reduction <add>, %44, %cst_17 [0] : vector<16x1xf32> to vector<1xf32>
    %46 = vector.shape_cast %45 : vector<1xf32> to vector<1x1xf32>
    %47 = vector.shape_cast %46 : vector<1x1xf32> to vector<1x1xf32>
    %48 = vector.broadcast %47 : vector<1x1xf32> to vector<1x128xf32>
    %c0_18 = arith.constant 0 : index
    %c0_19 = arith.constant 0 : index
    %49 = vector.load %arg5[%c0_18, %c0_19] : memref<1x128xf32, #tpu.memory_space<vmem>>, vector<1x128xf32>
    tpu.vector_store %arg5[%c0_18, %c0_19], %48 {strides = array<i32>} : memref<1x128xf32, #tpu.memory_space<vmem>>, vector<1x128xf32>,
    return
  }
  func.func @transform_0(%arg0: i32) -> (i32, i32) {
    %c0_i32 = arith.constant 0 : i32
    %c0_i32_0 = arith.constant 0 : i32
    return %arg0, %c0_i32 : i32, i32
  }
  func.func @transform_1(%arg0: i32) -> (i32, i32) {
    %c0_i32 = arith.constant 0 : i32
    %c0_i32_0 = arith.constant 0 : i32
    %c0_i32_1 = arith.constant 0 : i32
    return %c0_i32, %c0_i32_0 : i32, i32
  }
  func.func @transform_2(%arg0: i32) -> (i32, i32) {
    %c0_i32 = arith.constant 0 : i32
    %c0_i32_0 = arith.constant 0 : i32
    return %arg0, %c0_i32 : i32, i32
  }
  func.func @transform_3(%arg0: i32) -> (i32, i32) {
    %c0_i32 = arith.constant 0 : i32
    %c0_i32_0 = arith.constant 0 : i32
    %c0_i32_1 = arith.constant 0 : i32
    return %c0_i32, %c0_i32_0 : i32, i32
  }
  func.func @transform_4(%arg0: i32) -> (i32, i32) {
    %c0_i32 = arith.constant 0 : i32
    %c0_i32_0 = arith.constant 0 : i32
    return %c0_i32, %arg0 : i32, i32
  }
}

</mosaic_0001>

<bundles_post_ra>
// kernel: tpu_custom_call.1
= control target key start
LH: loop header
LB: loop body
LE: loop exit
PB: predicated region body
PF: predicated region fallthrough
CT: control target
= control target key end

     0   :  { %v257_v1 = vmov 0.0   ;;  %vm258_vm0 = vmmov 0   ;;  %s332_s0 = inlined_call_operand.vmem [shape: bf16[16,32], index: 0, kind: input, shape index: {}]   ;;  %s333_s1 = inlined_call_operand.vmem [shape: bf16[32,16], index: 1, kind: input, shape index: {}]   ;;  %s334_s2 = inlined_call_operand.vmem [shape: s32[16,1], index: 2, kind: input, shape index: {}]   ;;  %s335_s3 = inlined_call_operand.vmem [shape: s32[1,16], index: 3, kind: input, shape index: {}]   ;;  %s336_s4 = inlined_call_operand.hbm [shape: f32[1,128], index: 4, kind: output, shape index: {}]  }
   0x1   :  { %v218_v0 = vld [vmem:[%s333_s1] sm:$0xff]   ;;  %204 = vmatprep.subr.bf16.mxu0 %v257_v1  ;;  %v219_v2 = vld [vmem:[%s333_s1 + $0x8] sm:$0xff]   ;;  %208 = vmatprep.mubr.msk.bf16.mxu0 %vm258_vm0, %v257_v1 }
   0x2   :  { %205 = vmatpush3.bf16.msra.mxu0 %v218_v0 }
   0x3   :  { %206 = vmatprep.subr.bf16.mxu0 %v257_v1 }
   0x4   :  { %9 = vsyncpa [#allocation3], 0  ;;  %v220_v3 = vld [vmem:[%s332_s0] sm:$0xff]   ;;  %vm42_vm1 = vcmask 261120   ;;  %v259_v5 = vmov 0   ;;  %v110_v6 = vld [vmem:[%s334_s2 + $0x8] sm:$0xff]  ;;  %v99_v18 = vlaneseq }
   0x5   :  { %v109_v4 = vld [vmem:[%s334_s2] sm:$0xff]  ;;  %216 = vset.pattern.permute.xlu1 %v259_v5  ;;  %217 = vset.pattern.permute.xlu0 %v259_v5  ;;  %vm89_vm2 = vcmask 130048  }
   0x6   :  { %207 = vmatpush3.bf16.msra.mxu0 %v219_v2  ;;  %113 = vperm.xlu1 %216, %v109_v4   ;;  %v100_v22 = vshrl.u32 %v99_v18, 7  ;;  %v106_v23 = vand.u32 127, %v99_v18  ;;  %v198_v24 = vld [vmem:[%s335_s3] ss:$0 sm:$0xff]  ;;  %s260_s3 = smov [#allocation2]  }
   0x7   :  { %s186_s24 = sshll.u32 %s260_s3, 4  ;;  %s187_s24 = int_to_ptr.vmem [resolvable:$true] %s186_s24 }
   0x8   :  { %vm107_vm3 = vcmp.ne.s32.totalorder %v100_v22, %v106_v23  ;;  %v101_v26 = vadd.s32 8, %v100_v22  ;;  %s233_s25 = scalar_lea.vmem %s187_s24, 16  ;;  %s237_s26 = scalar_lea.vmem %s187_s24, 32 }
   0x9   :  { %209 = vmatmul.mubr.msk.bf16.vlgmr.msra.gmra.mrb[0].mxu0 %vm42_vm1, %v220_v3  ;;  %p234_p0 = scmp.ne.s32.totalorder %s187_s24, %s233_s25  ;;  %p238_p1 = scmp.lt.s32.totalorder %s187_s24, %s187_s24 }
   0xa   :  { %116 = vperm.xlu1 %216, %v110_v6   ;;  %vm108_vm6 = vcmp.ne.s32.totalorder %v101_v26, %v106_v23  ;;  %p239_p2 = scmp.lt.s32.totalorder %s237_s26, %s233_s25 }
   0xc   :  { %p240_p3 = por %p239_p2, %p238_p1 }
   0xe   :  { %p241_p4 = pnand %p240_p3, %p234_p0 }
  0x85   :  { %v114_v25 = vpop.permute.xlu1 %113 }
  0x86   :  { %vm122_vm4 = vcmp.eq.s32.totalorder %v114_v25, %v198_v24 }
  0x87   :  { %vm306_vm5 = vmand %vm122_vm4, %vm107_vm3 }
  0x88   :  { %v199_v31 = vsel %vm306_vm5, 1.0, %v257_v1 }
  0x89   :  { %v117_v29 = vpop.permute.xlu1 %116  ;;  %v142_v34 = vsel %vm89_vm2, %v199_v31, 0.0 }
  0x8a   :  { %vm123_vm7 = vcmp.eq.s32.totalorder %v117_v29, %v198_v24 }
  0x8b   :  { %vm125_vm8 = vmand %vm123_vm7, %vm108_vm6 }
  0x8c   :  { %v200_v37 = vsel %vm125_vm8, 1.0, %v257_v1 }
  0x8d   :  { %v145_v38 = vsel %vm89_vm2, %v200_v37, 0.0 }
  0xdc   :  { %v80_v7 = vpop.f32.mrb[0].mxu0 }
  0xdd   :  { %v87_v8 = vmul.f32 14.285714, %v80_v7  ;;  %v210_v9 = vpop.f32.mrb[1].mxu0 }
  0xde   :  { %v83_v10 = vpop.f32.mrb[2].mxu0 }
  0xdf   :  { %v88_v11 = vmul.f32 14.285714, %v83_v10  ;;  %v211_v12 = vpop.f32.mrb[3].mxu0  ;;  %v90_v13 = vsel %vm89_vm2, %v87_v8, -inf }
  0xe0   :  { %91 = vmax.xlane.f32.xlu0 %v90_v13 }
  0xe1   :  { %v93_v14 = vsel %vm89_vm2, %v88_v11, -inf }
  0xe4   :  { %94 = vmax.xlane.f32.xlu0 %v93_v14 }
 0x16d   :  { %v92_v15 = vpop.xlane.xlu0 %91 }
 0x16e   :  { %v96_v16 = vsub.f32 %v87_v8, %v92_v15 }
 0x170   :  { %v126_v17 = vmul.f32 1.442695, %v96_v16  ;;  %v148_v39 = vsel %vm306_vm5, %v96_v16, 0.0 }
 0x171   :  { %v95_v19 = vpop.xlane.xlu0 %94  ;;  %v150_v40 = vsel %vm89_vm2, %v148_v39, 0.0 }
 0x172   :  { %221 = vpow2.f32 %v126_v17  ;;  %v97_v20 = vsub.f32 %v88_v11, %v95_v19 }
 0x174   :  { %v128_v21 = vmul.f32 1.442695, %v97_v20  ;;  %v149_v41 = vsel %vm125_vm8, %v97_v20, 0.0 }
 0x175   :  { %v153_v42 = vsel %vm89_vm2, %v149_v41, 0.0 }
 0x176   :  { %223 = vpow2.f32 %v128_v21 }
 0x17c   :  { %v222_v27 = vpop.eup %221 }
 0x17d   :  { %v130_v30 = vsel %vm107_vm3, %v222_v27, 0.0 }
 0x17e   :  { %v132_v32 = vsel %vm89_vm2, %v130_v30, 0.0 }
 0x17f   :  { %133 = vadd.xlane.f32.xlu0 %v132_v32 }
 0x180   :  { %v224_v33 = vpop.eup %223 }
 0x181   :  { %v131_v35 = vsel %vm108_vm6, %v224_v33, 0.0 }
 0x182   :  { %v135_v36 = vsel %vm89_vm2, %v131_v35, 0.0 }
 0x183   :  { %143 = vadd.xlane.f32.xlu0 %v142_v34  ;;  %136 = vadd.xlane.f32.xlu1 %v135_v36 }
 0x187   :  { %146 = vadd.xlane.f32.xlu0 %v145_v38 }
 0x18b   :  { %151 = vadd.xlane.f32.xlu0 %v150_v40 }
 0x18f   :  { %154 = vadd.xlane.f32.xlu0 %v153_v42 }
 0x20c   :  { %v134_v43 = vpop.xlane.xlu0 %133 }
 0x20d   :  { %225 = vlog2.f32 %v134_v43 }
 0x210   :  { %v137_v44 = vpop.xlane.xlu1 %136  ;;  %v144_v45 = vpop.xlane.xlu0 %143 }
 0x211   :  { %227 = vrcp.f32 %v144_v45 }
 0x212   :  { %229 = vlog2.f32 %v137_v44 }
 0x214   :  { %v147_v46 = vpop.xlane.xlu0 %146 }
 0x215   :  { %231 = vrcp.f32 %v147_v46 }
 0x217   :  { %v226_v48 = vpop.eup %225 }
 0x218   :  { %v152_v47 = vpop.xlane.xlu0 %151  ;;  %v161_v52 = vmul.f32 0.6931472, %v226_v48 }
 0x21b   :  { %v228_v49 = vpop.eup %227 }
 0x21c   :  { %v230_v50 = vpop.eup %229  ;;  %v157_v51 = vmul.f32 %v228_v49, %v152_v47  ;;  %v155_v54 = vpop.xlane.xlu0 %154 }
 0x21d   :  { %v163_v55 = vmul.f32 0.6931472, %v230_v50 }
 0x21e   :  { %v164_v56 = vsub.f32 %v157_v51, %v161_v52 }
 0x21f   :  { %v232_v53 = vpop.eup %231 }
 0x220   :  { %v159_v57 = vmul.f32 %v232_v53, %v155_v54  ;;  %v166_v59 = vmul.f32 -1.0, %v164_v56 }
 0x222   :  { %v165_v58 = vsub.f32 %v159_v57, %v163_v55 }
 0x224   :  { %v167_v60 = vmul.f32 -1.0, %v165_v58 }
 0x226   :  { %v172_v61 = vadd.f32 %v167_v60, %v166_v59 }
 0x228   :  { %v173_v62 = vrot.slane %v172_v61, 4 }
 0x22a   :  { %v174_v63 = vadd.f32 %v173_v62, %v172_v61 }
 0x22c   :  { %v175_v0 = vrot.slane %v174_v63, 2 }
 0x22e   :  { %v176_v1 = vadd.f32 %v175_v0, %v174_v63 }
 0x230   :  { %v177_v2 = vrot.slane %v176_v1, 1 }
 0x232   :  { %v178_v3 = vadd.f32 %v177_v2, %v176_v1 }
 0x234   :  { %179 = vst [vmem:[#allocation2] sm:$0x1] %v178_v3 }
 0x235   :  { %244 = shalt.err (!%p241_p4)
}
 0x236   :  { %s245_s29 = scalar_lea.hbm %s336_s4, 16 }
 0x237   :  { %p246_p5 = scmp.ne.s32.totalorder %s336_s4, %s245_s29  ;;  %p249_p6 = scmp.lt.u32.totalorder %s245_s29, %s336_s4 }
 0x239   :  { %p251_p7 = pnand %p249_p6, %p246_p5 }
 0x23b   :  { %254 = shalt.err (!%p251_p7)
}
 0x23c   :  { %189 = dma.vmem_to_hbm [thread:$0]  %s187_s24, 16, %s336_s4, [#allocation3]  }
 0x23d   :  { %255 = dma.done.wait [#allocation3], 16  }
 0x23e   :  { %256 = vsyncadd [#allocation3], 4294967280 }
 0x23f   :  { %193 = vsyncpa [#allocation3], 1 }

// kernel: tpu_custom_call.1
= control target key start
LH: loop header
LB: loop body
LE: loop exit
PB: predicated region body
PF: predicated region fallthrough
CT: control target
= control target key end

     0   :  { %v257_v1 = vmov 0.0   ;;  %vm258_vm0 = vmmov 0   ;;  %s332_s0 = inlined_call_operand.vmem [shape: bf16[16,32], index: 0, kind: input, shape index: {}]   ;;  %s333_s1 = inlined_call_operand.vmem [shape: bf16[32,16], index: 1, kind: input, shape index: {}]   ;;  %s334_s2 = inlined_call_operand.vmem [shape: s32[16,1], index: 2, kind: input, shape index: {}]   ;;  %s335_s3 = inlined_call_operand.vmem [shape: s32[1,16], index: 3, kind: input, shape index: {}]   ;;  %s336_s4 = inlined_call_operand.hbm [shape: f32[1,128], index: 4, kind: output, shape index: {}]  }
   0x1   :  { %v218_v0 = vld [vmem:[%s333_s1] sm:$0xff]   ;;  %204 = vmatprep.subr.bf16.mxu0 %v257_v1  ;;  %v219_v2 = vld [vmem:[%s333_s1 + $0x8] sm:$0xff]   ;;  %208 = vmatprep.mubr.msk.bf16.mxu0 %vm258_vm0, %v257_v1 }
   0x2   :  { %205 = vmatpush3.bf16.msra.mxu0 %v218_v0 }
   0x3   :  { %206 = vmatprep.subr.bf16.mxu0 %v257_v1 }
   0x4   :  { %9 = vsyncpa [#allocation3], 0  ;;  %v220_v3 = vld [vmem:[%s332_s0] sm:$0xff]   ;;  %vm42_vm1 = vcmask 261120   ;;  %v259_v5 = vmov 0   ;;  %v110_v6 = vld [vmem:[%s334_s2 + $0x8] sm:$0xff]  ;;  %v99_v18 = vlaneseq }
   0x5   :  { %v109_v4 = vld [vmem:[%s334_s2] sm:$0xff]  ;;  %216 = vset.pattern.permute.xlu1 %v259_v5  ;;  %217 = vset.pattern.permute.xlu0 %v259_v5  ;;  %vm89_vm2 = vcmask 130048  }
   0x6   :  { %207 = vmatpush3.bf16.msra.mxu0 %v219_v2  ;;  %113 = vperm.xlu1 %216, %v109_v4   ;;  %v100_v22 = vshrl.u32 %v99_v18, 7  ;;  %v106_v23 = vand.u32 127, %v99_v18  ;;  %v198_v24 = vld [vmem:[%s335_s3] ss:$0 sm:$0xff]  ;;  %s260_s3 = smov [#allocation2]  }
   0x7   :  { %s186_s24 = sshll.u32 %s260_s3, 4  ;;  %s187_s24 = int_to_ptr.vmem [resolvable:$true] %s186_s24 }
   0x8   :  { %vm107_vm3 = vcmp.ne.s32.totalorder %v100_v22, %v106_v23  ;;  %v101_v26 = vadd.s32 8, %v100_v22  ;;  %s233_s25 = scalar_lea.vmem %s187_s24, 16  ;;  %s237_s26 = scalar_lea.vmem %s187_s24, 32 }
   0x9   :  { %209 = vmatmul.mubr.msk.bf16.vlgmr.msra.gmra.mrb[0].mxu0 %vm42_vm1, %v220_v3  ;;  %p234_p0 = scmp.ne.s32.totalorder %s187_s24, %s233_s25  ;;  %p238_p1 = scmp.lt.s32.totalorder %s187_s24, %s187_s24 }
   0xa   :  { %116 = vperm.xlu1 %216, %v110_v6   ;;  %vm108_vm6 = vcmp.ne.s32.totalorder %v101_v26, %v106_v23  ;;  %p239_p2 = scmp.lt.s32.totalorder %s237_s26, %s233_s25 }
   0xc   :  { %p240_p3 = por %p239_p2, %p238_p1 }
   0xe   :  { %p241_p4 = pnand %p240_p3, %p234_p0 }
  0x85   :  { %v114_v25 = vpop.permute.xlu1 %113 }
  0x86   :  { %vm122_vm4 = vcmp.eq.s32.totalorder %v114_v25, %v198_v24 }
  0x87   :  { %vm306_vm5 = vmand %vm122_vm4, %vm107_vm3 }
  0x88   :  { %v199_v31 = vsel %vm306_vm5, 1.0, %v257_v1 }
  0x89   :  { %v117_v29 = vpop.permute.xlu1 %116  ;;  %v142_v34 = vsel %vm89_vm2, %v199_v31, 0.0 }
  0x8a   :  { %vm123_vm7 = vcmp.eq.s32.totalorder %v117_v29, %v198_v24 }
  0x8b   :  { %vm125_vm8 = vmand %vm123_vm7, %vm108_vm6 }
  0x8c   :  { %v200_v37 = vsel %vm125_vm8, 1.0, %v257_v1 }
  0x8d   :  { %v145_v38 = vsel %vm89_vm2, %v200_v37, 0.0 }
  0xdc   :  { %v80_v7 = vpop.f32.mrb[0].mxu0 }
  0xdd   :  { %v87_v8 = vmul.f32 14.285714, %v80_v7  ;;  %v210_v9 = vpop.f32.mrb[1].mxu0 }
  0xde   :  { %v83_v10 = vpop.f32.mrb[2].mxu0 }
  0xdf   :  { %v88_v11 = vmul.f32 14.285714, %v83_v10  ;;  %v211_v12 = vpop.f32.mrb[3].mxu0  ;;  %v90_v13 = vsel %vm89_vm2, %v87_v8, -inf }
  0xe0   :  { %91 = vmax.xlane.f32.xlu0 %v90_v13 }
  0xe1   :  { %v93_v14 = vsel %vm89_vm2, %v88_v11, -inf }
  0xe4   :  { %94 = vmax.xlane.f32.xlu0 %v93_v14 }
 0x16d   :  { %v92_v15 = vpop.xlane.xlu0 %91 }
 0x16e   :  { %v96_v16 = vsub.f32 %v87_v8, %v92_v15 }
 0x170   :  { %v126_v17 = vmul.f32 1.442695, %v96_v16  ;;  %v148_v39 = vsel %vm306_vm5, %v96_v16, 0.0 }
 0x171   :  { %v95_v19 = vpop.xlane.xlu0 %94  ;;  %v150_v40 = vsel %vm89_vm2, %v148_v39, 0.0 }
 0x172   :  { %221 = vpow2.f32 %v126_v17  ;;  %v97_v20 = vsub.f32 %v88_v11, %v95_v19 }
 0x174   :  { %v128_v21 = vmul.f32 1.442695, %v97_v20  ;;  %v149_v41 = vsel %vm125_vm8, %v97_v20, 0.0 }
 0x175   :  { %v153_v42 = vsel %vm89_vm2, %v149_v41, 0.0 }
 0x176   :  { %223 = vpow2.f32 %v128_v21 }
 0x17c   :  { %v222_v27 = vpop.eup %221 }
 0x17d   :  { %v130_v30 = vsel %vm107_vm3, %v222_v27, 0.0 }
 0x17e   :  { %v132_v32 = vsel %vm89_vm2, %v130_v30, 0.0 }
 0x17f   :  { %133 = vadd.xlane.f32.xlu0 %v132_v32 }
 0x180   :  { %v224_v33 = vpop.eup %223 }
 0x181   :  { %v131_v35 = vsel %vm108_vm6, %v224_v33, 0.0 }
 0x182   :  { %v135_v36 = vsel %vm89_vm2, %v131_v35, 0.0 }
 0x183   :  { %143 = vadd.xlane.f32.xlu0 %v142_v34  ;;  %136 = vadd.xlane.f32.xlu1 %v135_v36 }
 0x187   :  { %146 = vadd.xlane.f32.xlu0 %v145_v38 }
 0x18b   :  { %151 = vadd.xlane.f32.xlu0 %v150_v40 }
 0x18f   :  { %154 = vadd.xlane.f32.xlu0 %v153_v42 }
 0x20c   :  { %v134_v43 = vpop.xlane.xlu0 %133 }
 0x20d   :  { %225 = vlog2.f32 %v134_v43 }
 0x210   :  { %v137_v44 = vpop.xlane.xlu1 %136  ;;  %v144_v45 = vpop.xlane.xlu0 %143 }
 0x211   :  { %227 = vrcp.f32 %v144_v45 }
 0x212   :  { %229 = vlog2.f32 %v137_v44 }
 0x214   :  { %v147_v46 = vpop.xlane.xlu0 %146 }
 0x215   :  { %231 = vrcp.f32 %v147_v46 }
 0x217   :  { %v226_v48 = vpop.eup %225 }
 0x218   :  { %v152_v47 = vpop.xlane.xlu0 %151  ;;  %v161_v52 = vmul.f32 0.6931472, %v226_v48 }
 0x21b   :  { %v228_v49 = vpop.eup %227 }
 0x21c   :  { %v230_v50 = vpop.eup %229  ;;  %v157_v51 = vmul.f32 %v228_v49, %v152_v47  ;;  %v155_v54 = vpop.xlane.xlu0 %154 }
 0x21d   :  { %v163_v55 = vmul.f32 0.6931472, %v230_v50 }
 0x21e   :  { %v164_v56 = vsub.f32 %v157_v51, %v161_v52 }
 0x21f   :  { %v232_v53 = vpop.eup %231 }
 0x220   :  { %v159_v57 = vmul.f32 %v232_v53, %v155_v54  ;;  %v166_v59 = vmul.f32 -1.0, %v164_v56 }
 0x222   :  { %v165_v58 = vsub.f32 %v159_v57, %v163_v55 }
 0x224   :  { %v167_v60 = vmul.f32 -1.0, %v165_v58 }
 0x226   :  { %v172_v61 = vadd.f32 %v167_v60, %v166_v59 }
 0x228   :  { %v173_v62 = vrot.slane %v172_v61, 4 }
 0x22a   :  { %v174_v63 = vadd.f32 %v173_v62, %v172_v61 }
 0x22c   :  { %v175_v0 = vrot.slane %v174_v63, 2 }
 0x22e   :  { %v176_v1 = vadd.f32 %v175_v0, %v174_v63 }
 0x230   :  { %v177_v2 = vrot.slane %v176_v1, 1 }
 0x232   :  { %v178_v3 = vadd.f32 %v177_v2, %v176_v1 }
 0x234   :  { %179 = vst [vmem:[#allocation2] sm:$0x1] %v178_v3 }
 0x235   :  { %244 = shalt.err (!%p241_p4)
}
 0x236   :  { %s245_s29 = scalar_lea.hbm %s336_s4, 16 }
 0x237   :  { %p246_p5 = scmp.ne.s32.totalorder %s336_s4, %s245_s29  ;;  %p249_p6 = scmp.lt.u32.totalorder %s245_s29, %s336_s4 }
 0x239   :  { %p251_p7 = pnand %p249_p6, %p246_p5 }
 0x23b   :  { %254 = shalt.err (!%p251_p7)
}
 0x23c   :  { %189 = dma.vmem_to_hbm [thread:$0]  %s187_s24, 16, %s336_s4, [#allocation3]  }
 0x23d   :  { %255 = dma.done.wait [#allocation3], 16  }
 0x23e   :  { %256 = vsyncadd [#allocation3], 4294967280 }
 0x23f   :  { %193 = vsyncpa [#allocation3], 1 }

</bundles_post_ra>
